<compile_context>
chip_gen: v7x
topology: tpu7x:2x2x1
jax: 0.10.0
libtpu: 0.0.40
codegen_flags: <defaults>
</compile_context>

<pallas_src>
import jax
import jax.numpy as jnp
from jax.experimental import pallas as pl
from jax.experimental.pallas import tpu as pltpu

_LANES = 128
_MAX_TILE_ROWS = 2048        # (2048, 128) f32 = 1 MiB per buffer
_MIN_PALLAS_ELEMS = 65536    # below this, plain XLA fuses the whole thing


def _simplified_nn_kernel(params_ref, x_ref, o_ref):
    # params_ref (SMEM, f32[8]): [w1_00, w1_01, b1_0, b1_1, w2_00, w2_10, b2_0, 0]
    x = x_ref[...].astype(jnp.float32)        # (tile_rows, 128), lane-dense
    w1_0 = params_ref[0]
    w1_1 = params_ref[1]
    b1_0 = params_ref[2]
    b1_1 = params_ref[3]
    w2_0 = params_ref[4]
    w2_1 = params_ref[5]
    b2 = params_ref[6]

    # Two hidden units as fused multiply-add chains on the same vreg (pure VPU).
    h0 = jnp.maximum(x * w1_0 + b1_0, 0.0)
    h1 = jnp.maximum(x * w1_1 + b1_1, 0.0)
    o_ref[...] = jnp.maximum(h0 * w2_0 + h1 * w2_1 + b2, 0.0)


def _pack_params(W1, B1, W2, B2):
    return jnp.concatenate([
        W1.reshape(-1).astype(jnp.float32),   # w1_00, w1_01
        B1.reshape(-1).astype(jnp.float32),   # b1_0,  b1_1
        W2.reshape(-1).astype(jnp.float32),   # w2_00, w2_10
        B2.reshape(-1).astype(jnp.float32),   # b2_0
        jnp.zeros((1,), jnp.float32),         # pad to 8
    ])


def _fused_elementwise(x, W1, B1, W2, B2):
    # Plain-JAX fused path for tiny inputs (XLA fuses this into one elementwise op).
    xf = x.reshape(-1).astype(jnp.float32)
    h0 = jnp.maximum(xf * W1[0, 0] + B1[0], 0.0)
    h1 = jnp.maximum(xf * W1[0, 1] + B1[1], 0.0)
    out = jnp.maximum(h0 * W2[0, 0] + h1 * W2[1, 0] + B2[0], 0.0)
    return out.reshape(-1, 1)


def simplified_nn_forward(inp, W1, B1, W2, B2, *, use_pallas=None):
    x_flat = inp.reshape(-1)
    N = x_flat.shape[0]

    if use_pallas is None:
        use_pallas = N >= _MIN_PALLAS_ELEMS
    if not use_pallas:
        return _fused_elementwise(inp, W1, B1, W2, B2)

    # ---- lane-dense layout: pad only to the next multiple of 128 (<=127 elems) ----
    rows = pl.cdiv(N, _LANES)
    pad = rows * _LANES - N
    x2d = (x_flat if pad == 0 else jnp.pad(x_flat, (0, pad))).reshape(rows, _LANES)

    # ---- tile choice: big tiles (amortize ~0.35us/step) but keep >=~8 grid steps
    #      for mid/large N so v7x can shard the "parallel" axis over both TCs. ----
    if rows <= 8:
        tile_rows = rows                                  # single block == full array
    else:
        tile_rows = min(_MAX_TILE_ROWS, ((pl.cdiv(rows, 8) + 7) // 8) * 8)

    grid = (pl.cdiv(rows, tile_rows),)                    # ragged last tile is masked
    params = _pack_params(W1, B1, W2, B2)

    cost = pl.CostEstimate(
        flops=11 * rows * _LANES,
        transcendentals=0,
        bytes_accessed=8 * rows * _LANES,                 # one f32 read + one f32 write
    )

    out2d = pl.pallas_call(
        _simplified_nn_kernel,
        out_shape=jax.ShapeDtypeStruct((rows, _LANES), jnp.float32),
        grid=grid,
        in_specs=[
            pl.BlockSpec(memory_space=pltpu.MemorySpace.SMEM),       # params (whole, SMEM)
            pl.BlockSpec((tile_rows, _LANES), lambda i: (i, 0)),     # x slab
        ],
        out_specs=pl.BlockSpec((tile_rows, _LANES), lambda i: (i, 0)),
        compiler_params=pltpu.CompilerParams(
            dimension_semantics=("parallel",),
        ),
        cost_estimate=cost,
    )(params, x2d)

    if pad == 0:
        return out2d.reshape(N, 1)                        # free bitcast, no extra HBM pass
    return out2d.reshape(-1)[:N].reshape(N, 1)            # only for ragged N (<=127 pad)


if __name__ == "__main__":
    key = jax.random.PRNGKey(0)
    k_w1, k_b1, k_w2, k_b2, k_x1, k_x2, k_x3 = jax.random.split(key, 7)

    # Parameters matching nn.Parameter shapes.
    W1 = jax.random.normal(k_w1, (1, 2), dtype=jnp.float32)
    B1 = jax.random.normal(k_b1, (2,), dtype=jnp.float32)
    W2 = jax.random.normal(k_w2, (2, 1), dtype=jnp.float32)
    B2 = jax.random.normal(k_b2, (1,), dtype=jnp.float32)

    def ref(x):
        xf = x.reshape(-1, 1).astype(jnp.float32)
        h0 = jnp.maximum(xf * W1[0, 0] + B1[0], 0.0)
        h1 = jnp.maximum(xf * W1[0, 1] + B1[1], 0.0)
        return jnp.maximum(h0 * W2[0, 0] + h1 * W2[1, 0] + B2[0], 0.0)

    # 1) Pallas path, lane-aligned N (2*4*16*16 = 2048 elems): no pad, no slice.
    x1 = jax.random.normal(k_x1, (2, 4, 16, 16), dtype=jnp.float32)
    out1 = jax.block_until_ready(
        simplified_nn_forward(x1, W1, B1, W2, B2, use_pallas=True))
    assert out1.shape == (x1.size, 1)
    assert jnp.allclose(out1, ref(x1), atol=1e-6, rtol=1e-6)

    # 2) Pallas path, ragged N (1000 elems): masked last tile + tiny tail pad/slice.
    x2 = jax.random.normal(k_x2, (1000,), dtype=jnp.float32)
    out2 = jax.block_until_ready(
        simplified_nn_forward(x2, W1, B1, W2, B2, use_pallas=True))
    assert out2.shape == (1000, 1)
    assert jnp.allclose(out2, ref(x2), atol=1e-6, rtol=1e-6)

    # 3) Tiny input goes through the small-N fast path (auto-dispatch).
    x3 = jax.random.normal(k_x3, (2, 8), dtype=jnp.float32)
    out3 = jax.block_until_ready(simplified_nn_forward(x3, W1, B1, W2, B2))
    assert out3.shape == (16, 1)
    assert jnp.allclose(out3, ref(x3), atol=1e-6, rtol=1e-6)

    print("KERNEL_OK")
</pallas_src>

<mosaic_0001>
module attributes {stable_mosaic.version = 11 : i64} {
  func.func @_simplified_nn_kernel(%arg0: i32, %arg1: memref<8xf32, #tpu.memory_space<smem>>, %arg2: memref<8x128xf32, #tpu.memory_space<vmem>>, %arg3: memref<8x128xf32, #tpu.memory_space<vmem>>) attributes {dimension_semantics = [#tpu.dimension_semantics<parallel>], iteration_bounds = array<i64: 2>, scalar_prefetch = 0 : i64, scratch_operands = 0 : i64, tpu.core_type = #tpu.core_type<tc>, window_params = [{transform_indices = @transform_0, window_bounds = array<i64: 8>}, {transform_indices = @transform_1, window_bounds = array<i64: 8, 128>}, {transform_indices = @transform_2, window_bounds = array<i64: 8, 128>}]} {
    %c0 = arith.constant 0 : index
    %c0_0 = arith.constant 0 : index
    %0 = vector.load %arg2[%c0, %c0_0] : memref<8x128xf32, #tpu.memory_space<vmem>>, vector<8x128xf32>
    %c0_1 = arith.constant 0 : index
    %1 = memref.load %arg1[%c0_1] : memref<8xf32, #tpu.memory_space<smem>>
    %c1 = arith.constant 1 : index
    %2 = memref.load %arg1[%c1] : memref<8xf32, #tpu.memory_space<smem>>
    %c2 = arith.constant 2 : index
    %3 = memref.load %arg1[%c2] : memref<8xf32, #tpu.memory_space<smem>>
    %c3 = arith.constant 3 : index
    %4 = memref.load %arg1[%c3] : memref<8xf32, #tpu.memory_space<smem>>
    %c4 = arith.constant 4 : index
    %5 = memref.load %arg1[%c4] : memref<8xf32, #tpu.memory_space<smem>>
    %c5 = arith.constant 5 : index
    %6 = memref.load %arg1[%c5] : memref<8xf32, #tpu.memory_space<smem>>
    %c6 = arith.constant 6 : index
    %7 = memref.load %arg1[%c6] : memref<8xf32, #tpu.memory_space<smem>>
    %8 = vector.broadcast %1 : f32 to vector<8x128xf32>
    %9 = arith.mulf %0, %8 : vector<8x128xf32>
    %10 = vector.broadcast %3 : f32 to vector<8x128xf32>
    %11 = arith.addf %9, %10 : vector<8x128xf32>
    %cst = arith.constant 0.000000e+00 : f32
    %12 = vector.broadcast %cst : f32 to vector<8x128xf32>
    %13 = arith.maximumf %11, %12 : vector<8x128xf32>
    %14 = vector.broadcast %2 : f32 to vector<8x128xf32>
    %15 = arith.mulf %0, %14 : vector<8x128xf32>
    %16 = vector.broadcast %4 : f32 to vector<8x128xf32>
    %17 = arith.addf %15, %16 : vector<8x128xf32>
    %cst_2 = arith.constant 0.000000e+00 : f32
    %18 = vector.broadcast %cst_2 : f32 to vector<8x128xf32>
    %19 = arith.maximumf %17, %18 : vector<8x128xf32>
    %20 = vector.broadcast %5 : f32 to vector<8x128xf32>
    %21 = arith.mulf %13, %20 : vector<8x128xf32>
    %22 = vector.broadcast %6 : f32 to vector<8x128xf32>
    %23 = arith.mulf %19, %22 : vector<8x128xf32>
    %24 = arith.addf %21, %23 : vector<8x128xf32>
    %25 = vector.broadcast %7 : f32 to vector<8x128xf32>
    %26 = arith.addf %24, %25 : vector<8x128xf32>
    %cst_3 = arith.constant 0.000000e+00 : f32
    %27 = vector.broadcast %cst_3 : f32 to vector<8x128xf32>
    %28 = arith.maximumf %26, %27 : vector<8x128xf32>
    %c0_4 = arith.constant 0 : index
    %c0_5 = arith.constant 0 : index
    %29 = vector.load %arg3[%c0_4, %c0_5] : memref<8x128xf32, #tpu.memory_space<vmem>>, vector<8x128xf32>
    tpu.vector_store %arg3[%c0_4, %c0_5], %28 {strides = array<i32>} : memref<8x128xf32, #tpu.memory_space<vmem>>, vector<8x128xf32>,
    return
  }
  func.func @transform_0(%arg0: i32) -> i32 {
    %c0_i32 = arith.constant 0 : i32
    %c0_i32_0 = arith.constant 0 : i32
    return %c0_i32 : i32
  }
  func.func @transform_1(%arg0: i32) -> (i32, i32) {
    %c0_i32 = arith.constant 0 : i32
    %c0_i32_0 = arith.constant 0 : i32
    return %arg0, %c0_i32 : i32, i32
  }
  func.func @transform_2(%arg0: i32) -> (i32, i32) {
    %c0_i32 = arith.constant 0 : i32
    %c0_i32_0 = arith.constant 0 : i32
    return %arg0, %c0_i32 : i32, i32
  }
}

</mosaic_0001>

<bundles_post_ra>
// kernel: tpu_custom_call.1
= control target key start
LH: loop header
LB: loop body
LE: loop exit
PB: predicated region body
PF: predicated region fallthrough
CT: control target
= control target key end

     0   :  { %7 = vsyncpa [#allocation5], 0  ;;  %s709_s0 = inlined_call_operand.hbm [shape: f32[8], index: 0, kind: input, shape index: {}]   ;;  %s710_s1 = inlined_call_operand.hbm [shape: f32[16,128], index: 1, kind: input, shape index: {}]   ;;  %s711_s2 = inlined_call_operand.hbm [shape: f32[16,128], index: 2, kind: output, shape index: {}]  }
   0x1   :  { %8 = vsyncpa [#allocation3], 0 }
   0x2   :  { %10 = vsyncpa [#allocation3 + $0x1], 0 }
   0x3   :  { %11 = vsyncpa [#allocation4], 0 }
   0x4   :  { %13 = vsyncpa [#allocation4 + $0x1], 0  ;;  %s504_s9 = smov 0   ;;  %s506_s10 = smov 0  }
   0x5   :  { %s508_s11 = smov 0   ;;  %s510_s12 = smov 0  }
   0x6 LB: > { %s525_s13 = sadd.s32 4294967295, %s484_s12   ;;  %s294_s14 = sadd.s32 4294967294, %s484_s12   ;;  %s484_s12 = sphi %s510_s12, %s732_s12   ;;  %s480_s11 = sphi %s508_s11, %s731_s11   ;;  %s476_s10 = sphi %s506_s10, %s730_s10   ;;  %s472_s9 = sphi %s504_s9, %s729_s9  }
   0x7   : > { %p60_p0 = scmp.ne.s32.totalorder %s476_s10, %s472_s9  ;;  %p712_p1 = scmp.eq.s32.totalorder %s525_s13, 0 }
   0x8   : > { %p90_p3 = scmp.eq.s32.totalorder %s294_s14, 1  ;;  %p295_p5 = scmp.ge.s32.totalorder %s484_s12, 1 }
   0x9   : > { %p534_p4 = por %p712_p1, %p60_p0  ;;  %p97_p7 = scmp.lt.s32.totalorder %s484_s12, 3 }
   0xa   : > { %p539_p6 = por %p90_p3, %p60_p0  ;;  %s550_s18 = sadd.s32 1, %s484_s12  }
   0xb   : > { %s715_s15 = scalar_select %p534_p4, 1, 0 }
   0xc   : > { %s716_s16 = scalar_select %p539_p6, 1, 0 }
   0xd   : > { %p544_p8 = pnand %p295_p5, %p97_p7  ;;  %s44_s19 = ssub.s32 %s484_s12, %s550_s18 }
   0xe   : > { %s47_s20 = sadd.s32 1, %s480_s11  ;;  %p563_p12 = scmp.eq.s32.totalorder %s44_s19, 0 }
   0xf   : > { %p322_p10 = pneg %p544_p8  ;;  %p54_p13 = scmp.ne.s32.totalorder %s480_s11, %s476_s10 }
  0x10   : > { %p55_p0 = scmp.eq.s32.totalorder %s484_s12, 0  ;;  %p335_p3 = scmp.lt.s32.totalorder %s484_s12, 2 }
  0x11   : > { %p559_p11 = pnand %p322_p10, %p712_p1  ;;  %s371_s25 = scalar_lea.hbm %s709_s0, 16 }
  0x12   : > { %p372_p5 = scmp.ne.s32.totalorder %s709_s0, %s371_s25  ;;  %p378_p1 = scmp.lt.u32.totalorder %s371_s25, %s709_s0 }
  0x13   : > { %p373_p7 = pneg %p559_p11 }
  0x15   : > { %p374_p10 = pnand %p373_p7, %p372_p5 }
  0x17   : > { %p375_p9 = pneg %p374_p10 }
  0x19   : > { %p380_p2 = pnand %p378_p1, %p375_p9 }
  0x1b   : > { %383 = shalt.err (!%p380_p2)
}
  0x1c   : > { %s486_s30 = smov [#allocation2]   ;;  %p56_p1 = por %p55_p0, %p54_p13 }
  0x1d   : > { %325 = dma.hbm_to_smem (!%p559_p11), %s709_s0, 16, %s486_s30, [#allocation5]  }
  0x1e   : > { %s590_s5 = scalar_select %p563_p12, %s480_s11, %s47_s20  }
  0x1f   : > { %p720_p2 = scmp.eq.s32.totalorder %s525_s13, 1  ;;  %s119_s7 = sand.u32 1, %s480_s11  }
  0x20   : > { %s299_s8 = sshll.u32 %s484_s12, 7  ;;  %s298_s14 = sshll.u32 %s119_s7, 3 }
  0x21   : > { %p602_p9 = por %p720_p2, %p54_p13  ;;  %s611_s23 = scalar_lea.hbm %s710_s1, %s299_s8 }
  0x22   : > { %s123_s20 = scalar_lea.vmem [#allocation6], %s298_s14  ;;  %p615_p11 = pnand %p335_p3, %p56_p1 }
  0x23   : > { %s721_s6 = scalar_select %p602_p9, 1, 0 }
  0x24   : > { %s130_s22 = sshll.u32 %s123_s20, 4  ;;  %s120_s25 = scalar_lea.sflag [#allocation3], %s119_s7  ;;  %s619_s22 = int_to_ptr.vmem [resolvable:$true] %s130_s22 }
  0x25   : > { %s384_s26 = scalar_lea.hbm %s611_s23, 128  ;;  %p386_p13 = pneg %p615_p11 }
  0x26   : > { %p385_p12 = scmp.ne.s32.totalorder %s611_s23, %s384_s26  ;;  %s389_s29 = scalar_lea.hbm %s710_s1, 256 }
  0x27   : > { %p390_p3 = scmp.lt.u32.totalorder %s611_s23, %s710_s1  ;;  %p391_p7 = scmp.lt.u32.totalorder %s389_s29, %s384_s26 }
  0x28   : > { %p387_p0 = pnand %p386_p13, %p385_p12  ;;  %p393_p1 = scmp.lt.u32.totalorder %s384_s26, %s611_s23 }
  0x29   : > { %p392_p10 = por %p391_p7, %p390_p3 }
  0x2a   : > { %p388_p5 = pneg %p387_p0 }
  0x2b   : > { %p394_p2 = por %p393_p1, %p392_p10 }
  0x2d   : > { %p395_p6 = pnand %p394_p2, %p388_p5 }
  0x2f   : > { %398 = shalt.err (!%p395_p6)
}
  0x30   : > { %s399_s4 = scalar_lea.vmem %s619_s22, 128  ;;  %s487_s7 = smov [#allocation6]  }
  0x31   : > { %p400_p12 = scmp.ne.s32.totalorder %s619_s22, %s399_s4  ;;  %s404_s8 = sshll.u32 %s487_s7, 4  ;;  %s405_s8 = int_to_ptr.vmem [resolvable:$false] %s404_s8 }
  0x32   : > { %s406_s14 = scalar_lea.vmem %s405_s8, 256  ;;  %p407_p4 = scmp.lt.s32.totalorder %s619_s22, %s405_s8 }
  0x33   : > { %p402_p0 = pnand %p400_p12, %p386_p13  ;;  %p408_p3 = scmp.lt.s32.totalorder %s406_s14, %s399_s4 }
  0x35   : > { %p403_p9 = pneg %p402_p0  ;;  %p409_p7 = por %p408_p3, %p407_p4 }
  0x37   : > { %p410_p10 = pnand %p409_p7, %p403_p9 }
  0x39   : > { %413 = shalt.err (!%p410_p10)
}
  0x3a   : > { %329 = dma.hbm_to_vmem [thread:$0]  (!%p615_p11), %s611_s23, 128, %s619_s22, %s120_s25  }
  0x3b   : > { %139 = sbr.rel (%p544_p8) target bundleno = 108 (0x6c), region = 28  ;;  %p723_p6 = scmp.eq.s32.totalorder (!%p544_p8), %s525_s13, 0 }
  0x42   : > { %459 = dma.done.wait (%p723_p6), [#allocation5], 16   ;;  %p724_p13 = pmov %p723_p6 }
  0x43   : > { %s653_s19 = sand.u32 1, %s476_s10   ;;  %p725_p4 = scmp.ne.s32.totalorder %s715_s15, 0 }
  0x44   : > { %461 = vsyncadd (%p724_p13), [#allocation5], 4294967280  ;;  %s302_s21 = sshll.u32 %s653_s19, 3  ;;  %s146_s20 = scalar_lea.sflag [#allocation3], %s653_s19 }
  0x45   : > { %s149_s24 = scalar_lea.vmem [#allocation6], %s302_s21 }
  0x46   : > { %463 = dma.done.wait (%p725_p4), %s146_s20, 128  }
  0x47   : > { %465 = vsyncadd (%p725_p4), %s146_s20, 4294967168 }
  0x48   : > { %154 = sfence }
  0x49   : > { %s172_s17 = sld [smem:[#allocation2]]  ;;  %s304_s23 = sld [smem:[#allocation2 + $0x1]]  ;;  %v171_v0 = vld [vmem:[%s149_s24] sm:$0xff] }
  0x4a   : > { %s305_s22 = sld [smem:[#allocation2 + $0x2]]  ;;  %s306_s25 = sld [smem:[#allocation2 + $0x3]] }
  0x4b   : > { %s307_s26 = sld [smem:[#allocation2 + $0x4]]  ;;  %s308_s27 = sld [smem:[#allocation2 + $0x5]] }
  0x4c   : > { %s309_s28 = sld [smem:[#allocation2 + $0x6]]  ;;  %s170_s15 = scalar_lea.vmem [#allocation7], %s302_s21 }
  0x4d   : > { %s212_s29 = sshll.u32 %s170_s15, 4  ;;  %s311_s30 = sshll.u32 %s525_s13, 7  ;;  %s662_s29 = int_to_ptr.vmem [resolvable:$true] %s212_s29 }
  0x4e   : > { %s667_s7 = scalar_lea.hbm %s711_s2, %s311_s30  ;;  %s199_s8 = scalar_lea.sflag [#allocation4], %s653_s19 }
  0x4f   : > { %v179_v1 = vstv %s172_s17  ;;  %v184_v4 = vstv %s304_s23  ;;  %s414_s14 = scalar_lea.vmem %s662_s29, 128  ;;  %p726_p9 = scmp.ne.s32.totalorder %s721_s6, 0 }
  0x50   : > { %v180_v2 = vmul.f32 %v179_v1, %v171_v0  ;;  %v181_v3 = vstv %s305_s22  ;;  %v185_v5 = vmul.f32 %v184_v4, %v171_v0  ;;  %v186_v6 = vstv %s306_s25  ;;  %p415_p8 = scmp.ne.s32.totalorder %s662_s29, %s414_s14  ;;  %s488_s13 = smov [#allocation7]  }
  0x51   : > { %v189_v9 = vstv %s307_s26  ;;  %v191_v11 = vstv %s308_s27  ;;  %s418_s21 = sshll.u32 %s488_s13, 4  ;;  %s419_s21 = int_to_ptr.vmem [resolvable:$false] %s418_s21 }
  0x52   : > { %v182_v7 = vadd.f32 %v181_v3, %v180_v2  ;;  %v187_v8 = vadd.f32 %v186_v6, %v185_v5  ;;  %v194_v15 = vstv %s309_s28  ;;  %p416_p11 = pnand %p415_p8, %p726_p9  ;;  %s420_s20 = scalar_lea.vmem %s419_s21, 256 }
  0x53   : > { %p421_p1 = scmp.lt.s32.totalorder %s662_s29, %s419_s21  ;;  %p422_p2 = scmp.lt.s32.totalorder %s420_s20, %s414_s14 }
  0x54   : > { %v183_v10 = vmax.f32 %v182_v7, 0.0  ;;  %v188_v12 = vmax.f32 %v187_v8, 0.0  ;;  %p417_p5 = pneg %p416_p11 }
  0x55   : > { %p423_p12 = por %p422_p2, %p421_p1 }
  0x56   : > { %v190_v13 = vmul.f32 %v189_v9, %v183_v10  ;;  %v192_v14 = vmul.f32 %v191_v11, %v188_v12 }
  0x57   : > { %p424_p0 = pnand %p423_p12, %p417_p5 }
  0x58   : > { %v193_v16 = vadd.f32 %v192_v14, %v190_v13 }
  0x5a   : > { %v195_v17 = vadd.f32 %v194_v15, %v193_v16 }
  0x5c   : > { %v196_v18 = vmax.f32 %v195_v17, 0.0 }
  0x5e   : > { %197 = vst [vmem:[%s170_s15] sm:$0xff] %v196_v18 }
  0x5f   : > { %427 = shalt.err (!%p424_p0)
}
  0x60   : > { %s428_s19 = scalar_lea.hbm %s667_s7, 128  ;;  %s432_s23 = scalar_lea.hbm %s711_s2, 256 }
  0x61   : > { %p429_p3 = scmp.ne.s32.totalorder %s667_s7, %s428_s19  ;;  %p433_p6 = scmp.lt.u32.totalorder %s667_s7, %s711_s2 }
  0x62   : > { %p434_p13 = scmp.lt.u32.totalorder %s432_s23, %s428_s19  ;;  %p436_p8 = scmp.lt.u32.totalorder %s428_s19, %s667_s7 }
  0x63   : > { %p430_p7 = pnand %p429_p3, %p726_p9 }
  0x64   : > { %p435_p4 = por %p434_p13, %p433_p6 }
  0x65   : > { %p431_p10 = pneg %p430_p7 }
  0x66   : > { %p437_p11 = por %p436_p8, %p435_p4 }
  0x68   : > { %p438_p5 = pnand %p437_p11, %p431_p10 }
  0x6a   : > { %441 = shalt.err (!%p438_p5)
}
  0x6b   : > { %320 = dma.vmem_to_hbm [thread:$0]  (%p726_p9), %s662_s29, 128, %s667_s7, %s199_s8  }
  0x6c PF: > { %s224_s26 = sand.u32 1, %s472_s9   ;;  %p727_p1 = scmp.ne.s32.totalorder %s716_s16, 0 }
  0x6d   : > { %p728_p2 = scmp.ge.s32.totalorder %s484_s12, 2  ;;  %s225_s27 = scalar_lea.sflag [#allocation4], %s224_s26 }
  0x6f   : > { %p331_p12 = pnand %p728_p2, %p727_p1 }
  0x71   : > { %467 = dma.done.wait (!%p331_p12), %s225_s27, 128  }
  0x72   : > { %469 = vsyncadd (!%p331_p12), %s225_s27, 4294967168  ;;  %p16_p0 = scmp.ge.s32.totalorder %s550_s18, 4   ;;  %s729_s9 = smov %s476_s10 }
  0x73   : > { %s730_s10 = smov %s480_s11  ;;  %s731_s11 = smov %s590_s5 }
  0x74   : > { %s732_s12 = smov %s550_s18  ;;  %18 = sbr.rel (!%p16_p0) target bundleno = 6 (0x6), region = 78 }
  0x7b   :  { %230 = vsyncpa [#allocation3], 1 }
  0x7c   :  { %232 = vsyncpa [#allocation3 + $0x1], 1 }
  0x7d   :  { %233 = vsyncpa [#allocation4], 1 }
  0x7e   :  { %235 = vsyncpa [#allocation4 + $0x1], 1 }
  0x7f   :  { %236 = vsyncpa [#allocation5], 1 }
  0x80   :  { %238 = vsyncpa [#allocation5 + $0x1], 1 }

</bundles_post_ra>
